<compile_context>
chip_gen: v7x
topology: tpu7x:2x2x1
jax: 0.10.0
libtpu: 0.0.40
codegen_flags: <defaults>
</compile_context>

<pallas_src>
import functools

import jax
import jax.numpy as jnp
from jax.experimental import pallas as pl
from jax.experimental.pallas import tpu as pltpu


def _round_up(x, m):
    return ((x + m - 1) // m) * m


def _vmem_capacity_bytes():
    # Generation-aware VMEM budget (v5e/v6e: 128 MiB, v7x: 64 MiB per core).
    try:
        return int(pltpu.get_tpu_info().vmem_capacity_bytes)
    except Exception:
        return 64 * 1024 * 1024  # conservative fallback (v7x per-core VMEM)


def _estimate_vmem_bytes(n_pad, d, tm, x_itemsize):
    # Resident operands are single-buffered; per-tile operands double-buffered.
    return (n_pad * d * x_itemsize          # resident full x
            + n_pad * 4                     # resident targets-as-row
            + 6 * tm * n_pad * 4            # sim + live masks/selects (f32-equiv)
            + 2 * 2 * tm * 4 * 2            # (tm,1) targets/margin tiles
            + 2 * 2 * tm * 4)               # (2,tm) output block


def weightlist_kernel(xf_ref, trow_ref, tcol_ref, m_ref, out_ref, *,
                      n_valid, exclude_self):
    tm = out_ref.shape[1]
    n_pad = xf_ref.shape[0]

    # Row tile sliced out of the resident full block (no duplicated x stream).
    row0 = pl.multiple_of(pl.program_id(0) * tm, tm)
    x_full = xf_ref[...]                      # (Np, d)  resident
    x_rows = xf_ref[pl.ds(row0, tm), :]       # (TM, d)  this step's anchors

    # sim tile = x_rows @ x_full.T, contracted over d directly on the MXU
    # (transposed-rhs dot_general, same form as the flash-attention reference
    # kernel's q.kT -> no XLU transpose / extra copy of the resident block).
    sim = jax.lax.dot_general(
        x_rows, x_full,
        dimension_numbers=(((1,), (1,)), ((), ())),
        preferred_element_type=jnp.float32)   # (TM, Np) f32 accumulation

    t_row = trow_ref[...]                     # (1, Np)  i32
    t_col = tcol_ref[...]                     # (TM, 1)  i32
    margin = m_ref[...]                       # (TM, 1)  f32

    # Label masks as pure broadcast compares (targets supplied in both
    # layouts from the wrapper, so no in-kernel transpose is needed).
    same = t_col == t_row                     # (TM, Np)
    diff = jnp.logical_not(same)

    if n_pad != n_valid:                      # static: only emitted when padded
        col_valid = jax.lax.broadcasted_iota(jnp.int32, (1, n_pad), 1) < n_valid
        same = jnp.logical_and(same, col_valid)
        diff = jnp.logical_and(diff, col_valid)

    # torch: pos_pair_ = sims with same label, then filtered with `< 1`
    # (drops self-similarity for L2-normalized embeddings).
    pos_valid = jnp.logical_and(same, sim < 1.0)
    if exclude_self:
        # bf16 MXU operands perturb the diagonal, so `< 1` alone can no longer
        # be relied on to drop self-similarity -> mask j == global row index.
        col_ids = jax.lax.broadcasted_iota(jnp.int32, (tm, n_pad), 1)
        row_ids = jax.lax.broadcasted_iota(jnp.int32, (tm, n_pad), 0) + row0
        pos_valid = jnp.logical_and(pos_valid, col_ids != row_ids)

    # pos_pair_[0] == min positive sim ;  neg_pair_[-1] == max negative sim
    min_pos = jnp.min(jnp.where(pos_valid, sim, jnp.inf), axis=1, keepdims=True)
    max_neg = jnp.max(jnp.where(diff, sim, -jnp.inf), axis=1, keepdims=True)

    # Per-row thresholds precomputed once -> one compare per element over the
    # (TM, Np) slab instead of add/sub chains (fewer VALU ops, fewer live temps).
    an_thr = min_pos - margin                 # (TM, 1)
    ap_thr = max_neg + margin                 # (TM, 1)
    # an_list[i] = #{ j : targets[j] != targets[i], sim > min_pos - margin }
    an_cond = jnp.logical_and(diff, sim > an_thr)
    # ap_list[i] = #{ j : pos_valid, sim < max_neg + margin }
    ap_cond = jnp.logical_and(pos_valid, sim < ap_thr)

    # Direct lane-dense stores (row 0 = ap counts, row 1 = an counts).
    out_ref[0, :] = jnp.sum(ap_cond.astype(jnp.int32), axis=1)
    out_ref[1, :] = jnp.sum(an_cond.astype(jnp.int32), axis=1)
    # NOTE: empty positive/negative sets yield +/-inf thresholds -> both
    # comparisons are false -> 0 counts, matching the torch "< 1 pair" branch.
    # TODO(synk): the loss / prints / mean-sim stats in the torch forward are
    # never returned by it, so they are intentionally not emitted.


def weight_list_forward(inputs, targets, margin, *, matmul_dtype=jnp.bfloat16):
    """Returns (ap_list, an_list) as int32 arrays of shape (n,).

    matmul_dtype=jnp.bfloat16 (default) runs the similarity matmul at bf16
    MXU rate (f32 accumulation) with an explicit self-index mask; pass
    jnp.float32 to reproduce the torch reference arithmetic exactly
    (self-similarity dropped via `sim < 1` alone).
    """
    n, d = inputs.shape
    x_itemsize = jnp.dtype(matmul_dtype).itemsize
    exclude_self = jnp.dtype(matmul_dtype) != jnp.dtype(jnp.float32)

    vmem_cap = _vmem_capacity_bytes()
    tile_budget = int(0.7 * vmem_cap)

    if n <= 128:
        # Small batch: a single row tile (MXU / per-step-overhead floor).
        tm = _round_up(n, 8)
        n_pad = tm
    else:
        # Largest tm whose working set fits this generation's VMEM budget,
        # always with >= 2 row tiles so both v7x TensorCores get work (the
        # grid axis is "parallel").  Typically 256/512 on v5e/v6e (128 MiB),
        # 128 on v7x (64 MiB) for large n.
        tm, n_pad = 128, _round_up(n, 128)
        for cand in (512, 256, 128):
            n_pad_c = _round_up(n, cand)
            if n_pad_c // cand < 2:
                continue
            if _estimate_vmem_bytes(n_pad_c, d, cand, x_itemsize) <= tile_budget:
                tm, n_pad = cand, n_pad_c
                break

    x = inputs.astype(matmul_dtype)
    t = targets.astype(jnp.int32)
    m = margin.astype(jnp.float32).reshape(-1)
    if n_pad != n:
        # Padded rows produce garbage counts (sliced off below); padded
        # columns are masked in-kernel via the iota col_valid mask.
        x = jnp.pad(x, ((0, n_pad - n), (0, 0)))
        t = jnp.pad(t, (0, n_pad - n), constant_values=-1)
        m = jnp.pad(m, (0, n_pad - n))

    t_row = t.reshape(1, n_pad)
    t_col = t.reshape(n_pad, 1)
    m_col = m.reshape(n_pad, 1)

    # Generation-aware VMEM clamp: ~80% of physical capacity (v7x ~51 MiB,
    # v5e/v6e ~102 MiB) with headroom for compiler-internal scratch.
    est = _estimate_vmem_bytes(n_pad, d, tm, x_itemsize)
    vmem_limit = int(min(max(int(1.5 * est), 32 * 1024 * 1024),
                         int(0.8 * vmem_cap)))

    kernel_fn = functools.partial(
        weightlist_kernel, n_valid=n, exclude_self=exclude_self)

    def build(single_buffer_resident):
        resident_kw = (dict(pipeline_mode=pl.Buffered(1))
                       if single_buffer_resident else {})
        in_specs = [
            pl.BlockSpec((n_pad, d), lambda i: (0, 0), **resident_kw),  # full x
            pl.BlockSpec((1, n_pad), lambda i: (0, 0), **resident_kw),  # targets row
            pl.BlockSpec((tm, 1), lambda i: (i, 0)),                    # targets col tile
            pl.BlockSpec((tm, 1), lambda i: (i, 0)),                    # margin tile
        ]
        return pl.pallas_call(
            kernel_fn,
            out_shape=jax.ShapeDtypeStruct((2, n_pad), jnp.int32),
            grid=(n_pad // tm,),
            in_specs=in_specs,
            out_specs=pl.BlockSpec((2, tm), lambda i: (0, i)),
            compiler_params=pltpu.CompilerParams(
                dimension_semantics=("parallel",),
                vmem_limit_bytes=vmem_limit,
            ),
        )

    try:
        # Constant-index resident operands single-buffered: halves the largest
        # VMEM line item (matters most inside v7x's 64 MiB).
        out = build(True)(x, t_row, t_col, m_col)
    except Exception:
        # Pallas version without BlockSpec pipeline_mode support: fall back to
        # default double-buffering (correctness unchanged, just more VMEM).
        out = build(False)(x, t_row, t_col, m_col)

    return out[0, :n], out[1, :n]


if __name__ == "__main__":
    key = jax.random.PRNGKey(0)
    n, d = 8, 32
    x = jax.random.normal(key, (n, d), dtype=jnp.float32)
    # L2-normalize embeddings (standard for this metric-learning loss; makes
    # self-similarity ~= 1 so the torch `pos_pair_ < 1` filter drops it).
    x = x / jnp.linalg.norm(x, axis=1, keepdims=True)

    targets = jnp.array([0, 0, 0, 0, 1, 1, 1, 1], dtype=jnp.int32)
    margin = jnp.full((n,), 0.1, dtype=jnp.float32)

    ap_list, an_list = weight_list_forward(x, targets, margin)
    jax.block_until_ready((ap_list, an_list))
    print("KERNEL_OK")
</pallas_src>

<mosaic_0001>
module attributes {stable_mosaic.version = 11 : i64} {
  func.func @weightlist_kernel(%arg0: i32, %arg1: memref<8x32xbf16, #tpu.memory_space<vmem>>, %arg2: memref<1x8xi32, #tpu.memory_space<vmem>>, %arg3: memref<8x1xi32, #tpu.memory_space<vmem>>, %arg4: memref<8x1xf32, #tpu.memory_space<vmem>>, %arg5: memref<2x8xi32, #tpu.memory_space<vmem>>) attributes {dimension_semantics = [#tpu.dimension_semantics<parallel>], iteration_bounds = array<i64: 1>, scalar_prefetch = 0 : i64, scratch_operands = 0 : i64, tpu.core_type = #tpu.core_type<tc>, window_params = [{pipeline_mode = #tpu.pipeline_mode<synchronous>, transform_indices = @transform_0, window_bounds = array<i64: 8, 32>}, {pipeline_mode = #tpu.pipeline_mode<synchronous>, transform_indices = @transform_1, window_bounds = array<i64: 1, 8>}, {transform_indices = @transform_2, window_bounds = array<i64: 8, 1>}, {transform_indices = @transform_3, window_bounds = array<i64: 8, 1>}, {transform_indices = @transform_4, window_bounds = array<i64: 2, 8>}]} {
    %c8_i32 = arith.constant 8 : i32
    %0 = arith.muli %arg0, %c8_i32 : i32
    %1 = tpu.assume_multiple %0, 8 : i32
    %c0 = arith.constant 0 : index
    %c0_0 = arith.constant 0 : index
    %2 = vector.load %arg1[%c0, %c0_0] : memref<8x32xbf16, #tpu.memory_space<vmem>>, vector<8x32xbf16>
    %3 = arith.index_cast %1 : i32 to index
    %c0_1 = arith.constant 0 : index
    %4 = vector.load %arg1[%3, %c0_1] : memref<8x32xbf16, #tpu.memory_space<vmem>>, vector<8x32xbf16>
    %cst = arith.constant dense<0.000000e+00> : vector<8x8xf32>
    %5 = tpu.matmul %4, %2, %cst {dimension_numbers = #tpu.dot_dimension_numbers<[1], [1], [0], [0], [0, 0, 1, 0], [], []>} : vector<8x32xbf16>, vector<8x32xbf16>, vector<8x8xf32> -> vector<8x8xf32>
    %c0_2 = arith.constant 0 : index
    %c0_3 = arith.constant 0 : index
    %6 = vector.load %arg2[%c0_2, %c0_3] : memref<1x8xi32, #tpu.memory_space<vmem>>, vector<1x8xi32>
    %c0_4 = arith.constant 0 : index
    %c0_5 = arith.constant 0 : index
    %7 = vector.load %arg3[%c0_4, %c0_5] : memref<8x1xi32, #tpu.memory_space<vmem>>, vector<8x1xi32>
    %c0_6 = arith.constant 0 : index
    %c0_7 = arith.constant 0 : index
    %8 = vector.load %arg4[%c0_6, %c0_7] : memref<8x1xf32, #tpu.memory_space<vmem>>, vector<8x1xf32>
    %9 = vector.broadcast %7 : vector<8x1xi32> to vector<8x8xi32>
    %10 = vector.broadcast %6 : vector<1x8xi32> to vector<8x8xi32>
    %11 = arith.cmpi eq, %9, %10 : vector<8x8xi32>
    %cst_8 = arith.constant dense<true> : vector<8x8xi1>
    %12 = arith.xori %11, %cst_8 : vector<8x8xi1>
    %cst_9 = arith.constant 1.000000e+00 : f32
    %13 = vector.broadcast %cst_9 : f32 to vector<8x8xf32>
    %14 = arith.cmpf olt, %5, %13 : vector<8x8xf32>
    %15 = arith.andi %11, %14 : vector<8x8xi1>
    %16 = tpu.iota {dimensions = array<i32: 1>} : vector<8x8xi32>
    %17 = tpu.iota {dimensions = array<i32: 0>} : vector<8x8xi32>
    %18 = vector.broadcast %1 : i32 to vector<8x8xi32>
    %19 = arith.addi %17, %18 : vector<8x8xi32>
    %20 = arith.cmpi ne, %16, %19 : vector<8x8xi32>
    %21 = arith.andi %15, %20 : vector<8x8xi1>
    %cst_10 = arith.constant 0x7F800000 : f32
    %22 = vector.broadcast %cst_10 : f32 to vector<8x8xf32>
    %23 = arith.select %21, %5, %22 : vector<8x8xi1>, vector<8x8xf32>
    %cst_11 = arith.constant dense<0x7F800000> : vector<8xf32>
    %24 = vector.multi_reduction <minimumf>, %23, %cst_11 [1] : vector<8x8xf32> to vector<8xf32>
    %25 = vector.shape_cast %24 : vector<8xf32> to vector<8x1xf32>
    %cst_12 = arith.constant 0xFF800000 : f32
    %26 = vector.broadcast %cst_12 : f32 to vector<8x8xf32>
    %27 = arith.select %12, %5, %26 : vector<8x8xi1>, vector<8x8xf32>
    %cst_13 = arith.constant dense<0xFF800000> : vector<8xf32>
    %28 = vector.multi_reduction <maximumf>, %27, %cst_13 [1] : vector<8x8xf32> to vector<8xf32>
    %29 = vector.shape_cast %28 : vector<8xf32> to vector<8x1xf32>
    %30 = arith.subf %25, %8 : vector<8x1xf32>
    %31 = arith.addf %29, %8 : vector<8x1xf32>
    %32 = vector.broadcast %30 : vector<8x1xf32> to vector<8x8xf32>
    %33 = arith.cmpf ogt, %5, %32 : vector<8x8xf32>
    %34 = arith.andi %12, %33 : vector<8x8xi1>
    %35 = vector.broadcast %31 : vector<8x1xf32> to vector<8x8xf32>
    %36 = arith.cmpf olt, %5, %35 : vector<8x8xf32>
    %37 = arith.andi %21, %36 : vector<8x8xi1>
    %38 = arith.extui %37 : vector<8x8xi1> to vector<8x8xi32>
    %cst_14 = arith.constant dense<0> : vector<8xi32>
    %39 = vector.multi_reduction <add>, %38, %cst_14 [1] : vector<8x8xi32> to vector<8xi32>
    %c0_15 = arith.constant 0 : index
    %c0_16 = arith.constant 0 : index
    %40 = vector.load %arg5[%c0_15, %c0_16] : memref<2x8xi32, #tpu.memory_space<vmem>>, vector<1x8xi32>
    %41 = vector.shape_cast %40 : vector<1x8xi32> to vector<8xi32>
    %42 = vector.shape_cast %39 : vector<8xi32> to vector<1x8xi32>
    tpu.vector_store %arg5[%c0_15, %c0_16], %42 {strides = array<i32>} : memref<2x8xi32, #tpu.memory_space<vmem>>, vector<1x8xi32>,
    %43 = arith.extui %34 : vector<8x8xi1> to vector<8x8xi32>
    %cst_17 = arith.constant dense<0> : vector<8xi32>
    %44 = vector.multi_reduction <add>, %43, %cst_17 [1] : vector<8x8xi32> to vector<8xi32>
    %c1 = arith.constant 1 : index
    %c0_18 = arith.constant 0 : index
    %45 = vector.load %arg5[%c1, %c0_18] : memref<2x8xi32, #tpu.memory_space<vmem>>, vector<1x8xi32>
    %46 = vector.shape_cast %45 : vector<1x8xi32> to vector<8xi32>
    %47 = vector.shape_cast %44 : vector<8xi32> to vector<1x8xi32>
    tpu.vector_store %arg5[%c1, %c0_18], %47 {strides = array<i32>} : memref<2x8xi32, #tpu.memory_space<vmem>>, vector<1x8xi32>,
    return
  }
  func.func @transform_0(%arg0: i32) -> (i32, i32) {
    %c0_i32 = arith.constant 0 : i32
    %c0_i32_0 = arith.constant 0 : i32
    %c0_i32_1 = arith.constant 0 : i32
    return %c0_i32, %c0_i32_0 : i32, i32
  }
  func.func @transform_1(%arg0: i32) -> (i32, i32) {
    %c0_i32 = arith.constant 0 : i32
    %c0_i32_0 = arith.constant 0 : i32
    %c0_i32_1 = arith.constant 0 : i32
    return %c0_i32, %c0_i32_0 : i32, i32
  }
  func.func @transform_2(%arg0: i32) -> (i32, i32) {
    %c0_i32 = arith.constant 0 : i32
    %c0_i32_0 = arith.constant 0 : i32
    return %arg0, %c0_i32 : i32, i32
  }
  func.func @transform_3(%arg0: i32) -> (i32, i32) {
    %c0_i32 = arith.constant 0 : i32
    %c0_i32_0 = arith.constant 0 : i32
    return %arg0, %c0_i32 : i32, i32
  }
  func.func @transform_4(%arg0: i32) -> (i32, i32) {
    %c0_i32 = arith.constant 0 : i32
    %c0_i32_0 = arith.constant 0 : i32
    return %c0_i32, %arg0 : i32, i32
  }
}

module attributes {stable_mosaic.version = 11 : i64} {
  func.func @weightlist_kernel(%arg0: i32, %arg1: memref<8x32xbf16, #tpu.memory_space<vmem>>, %arg2: memref<1x8xi32, #tpu.memory_space<vmem>>, %arg3: memref<8x1xi32, #tpu.memory_space<vmem>>, %arg4: memref<8x1xf32, #tpu.memory_space<vmem>>, %arg5: memref<2x8xi32, #tpu.memory_space<vmem>>) attributes {dimension_semantics = [#tpu.dimension_semantics<parallel>], iteration_bounds = array<i64: 1>, scalar_prefetch = 0 : i64, scratch_operands = 0 : i64, tpu.core_type = #tpu.core_type<tc>, window_params = [{pipeline_mode = #tpu.pipeline_mode<synchronous>, transform_indices = @transform_0, window_bounds = array<i64: 8, 32>}, {pipeline_mode = #tpu.pipeline_mode<synchronous>, transform_indices = @transform_1, window_bounds = array<i64: 1, 8>}, {transform_indices = @transform_2, window_bounds = array<i64: 8, 1>}, {transform_indices = @transform_3, window_bounds = array<i64: 8, 1>}, {transform_indices = @transform_4, window_bounds = array<i64: 2, 8>}]} {
    %c8_i32 = arith.constant 8 : i32
    %0 = arith.muli %arg0, %c8_i32 : i32
    %1 = tpu.assume_multiple %0, 8 : i32
    %c0 = arith.constant 0 : index
    %c0_0 = arith.constant 0 : index
    %2 = vector.load %arg1[%c0, %c0_0] : memref<8x32xbf16, #tpu.memory_space<vmem>>, vector<8x32xbf16>
    %3 = arith.index_cast %1 : i32 to index
    %c0_1 = arith.constant 0 : index
    %4 = vector.load %arg1[%3, %c0_1] : memref<8x32xbf16, #tpu.memory_space<vmem>>, vector<8x32xbf16>
    %cst = arith.constant dense<0.000000e+00> : vector<8x8xf32>
    %5 = tpu.matmul %4, %2, %cst {dimension_numbers = #tpu.dot_dimension_numbers<[1], [1], [0], [0], [0, 0, 1, 0], [], []>} : vector<8x32xbf16>, vector<8x32xbf16>, vector<8x8xf32> -> vector<8x8xf32>
    %c0_2 = arith.constant 0 : index
    %c0_3 = arith.constant 0 : index
    %6 = vector.load %arg2[%c0_2, %c0_3] : memref<1x8xi32, #tpu.memory_space<vmem>>, vector<1x8xi32>
    %c0_4 = arith.constant 0 : index
    %c0_5 = arith.constant 0 : index
    %7 = vector.load %arg3[%c0_4, %c0_5] : memref<8x1xi32, #tpu.memory_space<vmem>>, vector<8x1xi32>
    %c0_6 = arith.constant 0 : index
    %c0_7 = arith.constant 0 : index
    %8 = vector.load %arg4[%c0_6, %c0_7] : memref<8x1xf32, #tpu.memory_space<vmem>>, vector<8x1xf32>
    %9 = vector.broadcast %7 : vector<8x1xi32> to vector<8x8xi32>
    %10 = vector.broadcast %6 : vector<1x8xi32> to vector<8x8xi32>
    %11 = arith.cmpi eq, %9, %10 : vector<8x8xi32>
    %cst_8 = arith.constant dense<true> : vector<8x8xi1>
    %12 = arith.xori %11, %cst_8 : vector<8x8xi1>
    %cst_9 = arith.constant 1.000000e+00 : f32
    %13 = vector.broadcast %cst_9 : f32 to vector<8x8xf32>
    %14 = arith.cmpf olt, %5, %13 : vector<8x8xf32>
    %15 = arith.andi %11, %14 : vector<8x8xi1>
    %16 = tpu.iota {dimensions = array<i32: 1>} : vector<8x8xi32>
    %17 = tpu.iota {dimensions = array<i32: 0>} : vector<8x8xi32>
    %18 = vector.broadcast %1 : i32 to vector<8x8xi32>
    %19 = arith.addi %17, %18 : vector<8x8xi32>
    %20 = arith.cmpi ne, %16, %19 : vector<8x8xi32>
    %21 = arith.andi %15, %20 : vector<8x8xi1>
    %cst_10 = arith.constant 0x7F800000 : f32
    %22 = vector.broadcast %cst_10 : f32 to vector<8x8xf32>
    %23 = arith.select %21, %5, %22 : vector<8x8xi1>, vector<8x8xf32>
    %cst_11 = arith.constant dense<0x7F800000> : vector<8xf32>
    %24 = vector.multi_reduction <minimumf>, %23, %cst_11 [1] : vector<8x8xf32> to vector<8xf32>
    %25 = vector.shape_cast %24 : vector<8xf32> to vector<8x1xf32>
    %cst_12 = arith.constant 0xFF800000 : f32
    %26 = vector.broadcast %cst_12 : f32 to vector<8x8xf32>
    %27 = arith.select %12, %5, %26 : vector<8x8xi1>, vector<8x8xf32>
    %cst_13 = arith.constant dense<0xFF800000> : vector<8xf32>
    %28 = vector.multi_reduction <maximumf>, %27, %cst_13 [1] : vector<8x8xf32> to vector<8xf32>
    %29 = vector.shape_cast %28 : vector<8xf32> to vector<8x1xf32>
    %30 = arith.subf %25, %8 : vector<8x1xf32>
    %31 = arith.addf %29, %8 : vector<8x1xf32>
    %32 = vector.broadcast %30 : vector<8x1xf32> to vector<8x8xf32>
    %33 = arith.cmpf ogt, %5, %32 : vector<8x8xf32>
    %34 = arith.andi %12, %33 : vector<8x8xi1>
    %35 = vector.broadcast %31 : vector<8x1xf32> to vector<8x8xf32>
    %36 = arith.cmpf olt, %5, %35 : vector<8x8xf32>
    %37 = arith.andi %21, %36 : vector<8x8xi1>
    %38 = arith.extui %37 : vector<8x8xi1> to vector<8x8xi32>
    %cst_14 = arith.constant dense<0> : vector<8xi32>
    %39 = vector.multi_reduction <add>, %38, %cst_14 [1] : vector<8x8xi32> to vector<8xi32>
    %c0_15 = arith.constant 0 : index
    %c0_16 = arith.constant 0 : index
    %40 = vector.load %arg5[%c0_15, %c0_16] : memref<2x8xi32, #tpu.memory_space<vmem>>, vector<1x8xi32>
    %41 = vector.shape_cast %40 : vector<1x8xi32> to vector<8xi32>
    %42 = vector.shape_cast %39 : vector<8xi32> to vector<1x8xi32>
    tpu.vector_store %arg5[%c0_15, %c0_16], %42 {strides = array<i32>} : memref<2x8xi32, #tpu.memory_space<vmem>>, vector<1x8xi32>,
    %43 = arith.extui %34 : vector<8x8xi1> to vector<8x8xi32>
    %cst_17 = arith.constant dense<0> : vector<8xi32>
    %44 = vector.multi_reduction <add>, %43, %cst_17 [1] : vector<8x8xi32> to vector<8xi32>
    %c1 = arith.constant 1 : index
    %c0_18 = arith.constant 0 : index
    %45 = vector.load %arg5[%c1, %c0_18] : memref<2x8xi32, #tpu.memory_space<vmem>>, vector<1x8xi32>
    %46 = vector.shape_cast %45 : vector<1x8xi32> to vector<8xi32>
    %47 = vector.shape_cast %44 : vector<8xi32> to vector<1x8xi32>
    tpu.vector_store %arg5[%c1, %c0_18], %47 {strides = array<i32>} : memref<2x8xi32, #tpu.memory_space<vmem>>, vector<1x8xi32>,
    return
  }
  func.func @transform_0(%arg0: i32) -> (i32, i32) {
    %c0_i32 = arith.constant 0 : i32
    %c0_i32_0 = arith.constant 0 : i32
    %c0_i32_1 = arith.constant 0 : i32
    return %c0_i32, %c0_i32_0 : i32, i32
  }
  func.func @transform_1(%arg0: i32) -> (i32, i32) {
    %c0_i32 = arith.constant 0 : i32
    %c0_i32_0 = arith.constant 0 : i32
    %c0_i32_1 = arith.constant 0 : i32
    return %c0_i32, %c0_i32_0 : i32, i32
  }
  func.func @transform_2(%arg0: i32) -> (i32, i32) {
    %c0_i32 = arith.constant 0 : i32
    %c0_i32_0 = arith.constant 0 : i32
    return %arg0, %c0_i32 : i32, i32
  }
  func.func @transform_3(%arg0: i32) -> (i32, i32) {
    %c0_i32 = arith.constant 0 : i32
    %c0_i32_0 = arith.constant 0 : i32
    return %arg0, %c0_i32 : i32, i32
  }
  func.func @transform_4(%arg0: i32) -> (i32, i32) {
    %c0_i32 = arith.constant 0 : i32
    %c0_i32_0 = arith.constant 0 : i32
    return %c0_i32, %arg0 : i32, i32
  }
}

</mosaic_0001>

<bundles_post_ra>
// kernel: tpu_custom_call.1
= control target key start
LH: loop header
LB: loop body
LE: loop exit
PB: predicated region body
PF: predicated region fallthrough
CT: control target
= control target key end

     0   :  { %vm26_vm0 = vcmask 261120   ;;  %v216_v1 = vmov 0.0   ;;  %vm217_vm1 = vmmov 0   ;;  %v218_v4 = vmov 0   ;;  %s293_s0 = inlined_call_operand.vmem [shape: bf16[8,32], index: 0, kind: input, shape index: {}]   ;;  %s294_s1 = inlined_call_operand.vmem [shape: s32[1,8], index: 1, kind: input, shape index: {}]   ;;  %s295_s2 = inlined_call_operand.vmem [shape: s32[8,1], index: 2, kind: input, shape index: {}]   ;;  %s296_s3 = inlined_call_operand.vmem [shape: f32[8,1], index: 3, kind: input, shape index: {}]   ;;  %s297_s4 = inlined_call_operand.hbm [shape: s32[2,8], index: 4, kind: output, shape index: {}]  }
   0x1   :  { %v20_v0 = vld [vmem:[%s293_s0] sm:$0xf]  ;;  %179 = vmatprep.subr.bf16.mxu0 %v216_v1  ;;  %181 = vmatprep.mubr.msk.bf16.mxu0 %vm217_vm1, %v216_v1 }
   0x2   :  { %v31_v2 = vsel %vm26_vm0, %v20_v0, 0  ;;  %v74_v3 = vld [vmem:[%s295_s2] sm:$0xff]  ;;  %190 = vset.pattern.permute.xlu0 %v218_v4 }
   0x3   :  { %180 = vmatpush3.bf16.xpose.msra.mxu0 %v31_v2 }
   0x4   :  { %9 = vsyncpa [#allocation3], 0  ;;  %77 = vperm.xlu0 %190, %v74_v3   ;;  %191 = vset.pattern.permute.xlu1 %v218_v4  ;;  %v25_v5 = vld [vmem:[%s293_s0] sm:$0xf]  ;;  %v87_v8 = vlaneseq  ;;  %vm219_vm3 = vmmov 1   ;;  %vm96_vm5 = vcmask 64512  }
   0x5   :  { %v176_v7 = vld [vmem:[%s294_s1] ss:$0 sm:$0xff]  ;;  %vm138_vm14 = vcmask 57344   ;;  %s220_s2 = smov [#allocation2]  }
   0x6   :  { %v88_v9 = vand.u32 127, %v87_v8  ;;  %v90_v10 = vshrl.u32 %v87_v8, 7  ;;  %v75_v21 = vld [vmem:[%s296_s3] sm:$0xff]  ;;  %s165_s3 = sshll.u32 %s220_s2, 4  ;;  %s166_s3 = int_to_ptr.vmem [resolvable:$true] %s165_s3 }
   0x7   :  { %s192_s23 = scalar_lea.vmem %s166_s3, 32  ;;  %p197_p1 = scmp.lt.s32.totalorder %s166_s3, %s166_s3 }
   0x8   :  { %vm93_vm6 = vcmp.ne.s32.totalorder %v88_v9, %v90_v10  ;;  %v136_v44 = vsub.s32 %v88_v9, %v90_v10  ;;  %p193_p0 = scmp.ne.s32.totalorder %s166_s3, %s192_s23  ;;  %p198_p2 = scmp.lt.s32.totalorder %s192_s23, %s192_s23 }
   0xa   :  { %182 = vmatmul.mubr.msk.bf16.vlgmr.msra.gmra.mrb[0].mxu0 %vm26_vm0, %v25_v5  ;;  %p199_p3 = por %p198_p2, %p197_p1 }
   0xc   :  { %p200_p4 = pnand %p199_p3, %p193_p0 }
  0x83   :  { %v78_v6 = vpop.permute.xlu0 %77 }
  0x84   :  { %vm83_vm2 = vcmp.eq.s32.totalorder %v78_v6, %v176_v7 }
  0x85   :  { %vm258_vm4 = vmxor %vm83_vm2, %vm219_vm3 }
  0xdd   :  { %v67_v12 = vpop.f32.mrb[0].mxu0 }
  0xde   :  { %v183_v13 = vpop.f32.mrb[1].mxu0  ;;  %v100_v14 = vsel %vm258_vm4, %v67_v12, -inf  ;;  %vm85_vm7 = vcmp.lt.f32.partialorder %v67_v12, 1.0 }
  0xdf   :  { %v70_v15 = vpop.f32.mrb[2].mxu0  ;;  %v101_v16 = vsel %vm96_vm5, %v100_v14, -inf  ;;  %vm86_vm8 = vmand %vm83_vm2, %vm85_vm7 }
  0xe0   :  { %102 = vmax.xlane.f32.xlu1 %v101_v16  ;;  %v184_v17 = vpop.f32.mrb[3].mxu0  ;;  %vm265_vm9 = vmand %vm86_vm8, %vm93_vm6 }
  0xe1   :  { %v95_v19 = vsel %vm265_vm9, %v67_v12, inf }
  0xe2   :  { %v97_v20 = vsel %vm96_vm5, %v95_v19, inf }
  0xe3   :  { %98 = vmin.xlane.f32.xlu0 %v97_v20 }
 0x16d   :  { %v103_v24 = vpop.xlane.xlu1 %102 }
 0x16e   :  { %v105_v25 = vadd.f32 %v103_v24, %v75_v21 }
 0x170   :  { %v99_v22 = vpop.xlane.xlu0 %98 }
 0x171   :  { %v104_v23 = vsub.f32 %v99_v22, %v75_v21 }
 0x173   :  { %108 = vperm.xlu1 %191, %v104_v23  }
 0x177   :  { %115 = vperm.xlu1 %191, %v105_v25  }
 0x1f2   :  { %v109_v26 = vpop.permute.xlu1 %108 }
 0x1f3   :  { %vm111_vm10 = vcmp.gt.f32.partialorder %v67_v12, %v109_v26 }
 0x1f4   :  { %vm112_vm11 = vmand %vm258_vm4, %vm111_vm10 }
 0x1f5   :  { %v140_v28 = vsel %vm112_vm11, 1, %v218_v4 }
 0x1f6   :  { %v116_v27 = vpop.permute.xlu1 %115  ;;  %v141_v31 = vsel %vm96_vm5, %v140_v28, 0 }
 0x1f7   :  { %vm118_vm12 = vcmp.lt.f32.partialorder %v67_v12, %v116_v27  ;;  %v143_v36 = vshrl.u32 %v141_v31, 16  ;;  %v142_v38 = vand.u32 65535, %v141_v31 }
 0x1f8   :  { %vm119_vm13 = vmand %vm265_vm9, %vm118_vm12 }
 0x1f9   :  { %v120_v29 = vsel %vm119_vm13, 1, %v218_v4  ;;  %v145_v37 = vcvt.s32.f32 %v143_v36  ;;  %v144_v39 = vcvt.s32.f32 %v142_v38 }
 0x1fa   :  { %v121_v30 = vsel %vm96_vm5, %v120_v29, 0 }
 0x1fb   :  { %v123_v32 = vshrl.u32 %v121_v30, 16  ;;  %v122_v33 = vand.u32 65535, %v121_v30 }
 0x1fd   :  { %v125_v34 = vcvt.s32.f32 %v123_v32  ;;  %v124_v35 = vcvt.s32.f32 %v122_v33 }
 0x1ff   :  { %128 = vadd.xlane.f32.xlu1 %v125_v34  ;;  %126 = vadd.xlane.f32.xlu0 %v124_v35 }
 0x203   :  { %148 = vadd.xlane.f32.xlu0 %v145_v37 }
 0x207   :  { %146 = vadd.xlane.f32.xlu0 %v144_v39 }
 0x28c   :  { %v129_v40 = vpop.xlane.xlu1 %128  ;;  %v127_v41 = vpop.xlane.xlu0 %126 }
 0x28d   :  { %v131_v42 = vcvt.f32.s32 %v129_v40  ;;  %v130_v45 = vcvt.f32.s32 %v127_v41 }
 0x28f   :  { %v132_v43 = vshll.u32 %v131_v42, 16 }
 0x290   :  { %v149_v46 = vpop.xlane.xlu0 %148 }
 0x291   :  { %v133_v47 = vadd.s32 %v132_v43, %v130_v45  ;;  %v151_v48 = vcvt.f32.s32 %v149_v46 }
 0x293   :  { %v137_v49 = vrot.slane %v133_v47, %v136_v44  ;;  %v152_v51 = vshll.u32 %v151_v48, 16 }
 0x294   :  { %v147_v50 = vpop.xlane.xlu0 %146 }
 0x295   :  { %v150_v52 = vcvt.f32.s32 %v147_v50  ;;  %139 = vst.msk [vmem:[#allocation2] sm:$0x1] %vm138_vm14, %v137_v49 }
 0x297   :  { %v153_v53 = vadd.s32 %v152_v51, %v150_v52 }
 0x299   :  { %v157_v54 = vrot.slane %v153_v53, %v136_v44 }
 0x29b   :  { %158 = vst.msk [vmem:[#allocation2 + $0x1] sm:$0x1] %vm138_vm14, %v157_v54 }
 0x29c   :  { %203 = shalt.err (!%p200_p4)
}
 0x29d   :  { %s204_s26 = scalar_lea.hbm %s297_s4, 32 }
 0x29e   :  { %p205_p5 = scmp.ne.s32.totalorder %s297_s4, %s204_s26  ;;  %p208_p6 = scmp.lt.u32.totalorder %s204_s26, %s297_s4 }
 0x2a0   :  { %p210_p7 = pnand %p208_p6, %p205_p5 }
 0x2a2   :  { %213 = shalt.err (!%p210_p7)
}
 0x2a3   :  { %168 = dma.vmem_to_hbm [thread:$0]  %s166_s3, 32, %s297_s4, [#allocation3]  }
 0x2a4   :  { %214 = dma.done.wait [#allocation3], 32  }
 0x2a5   :  { %215 = vsyncadd [#allocation3], 4294967264 }
 0x2a6   :  { %172 = vsyncpa [#allocation3], 1 }

// kernel: tpu_custom_call.1
= control target key start
LH: loop header
LB: loop body
LE: loop exit
PB: predicated region body
PF: predicated region fallthrough
CT: control target
= control target key end

     0   :  { %vm26_vm0 = vcmask 261120   ;;  %v216_v1 = vmov 0.0   ;;  %vm217_vm1 = vmmov 0   ;;  %v218_v4 = vmov 0   ;;  %s293_s0 = inlined_call_operand.vmem [shape: bf16[8,32], index: 0, kind: input, shape index: {}]   ;;  %s294_s1 = inlined_call_operand.vmem [shape: s32[1,8], index: 1, kind: input, shape index: {}]   ;;  %s295_s2 = inlined_call_operand.vmem [shape: s32[8,1], index: 2, kind: input, shape index: {}]   ;;  %s296_s3 = inlined_call_operand.vmem [shape: f32[8,1], index: 3, kind: input, shape index: {}]   ;;  %s297_s4 = inlined_call_operand.hbm [shape: s32[2,8], index: 4, kind: output, shape index: {}]  }
   0x1   :  { %v20_v0 = vld [vmem:[%s293_s0] sm:$0xf]  ;;  %179 = vmatprep.subr.bf16.mxu0 %v216_v1  ;;  %181 = vmatprep.mubr.msk.bf16.mxu0 %vm217_vm1, %v216_v1 }
   0x2   :  { %v31_v2 = vsel %vm26_vm0, %v20_v0, 0  ;;  %v74_v3 = vld [vmem:[%s295_s2] sm:$0xff]  ;;  %190 = vset.pattern.permute.xlu0 %v218_v4 }
   0x3   :  { %180 = vmatpush3.bf16.xpose.msra.mxu0 %v31_v2 }
   0x4   :  { %9 = vsyncpa [#allocation3], 0  ;;  %77 = vperm.xlu0 %190, %v74_v3   ;;  %191 = vset.pattern.permute.xlu1 %v218_v4  ;;  %v25_v5 = vld [vmem:[%s293_s0] sm:$0xf]  ;;  %v87_v8 = vlaneseq  ;;  %vm219_vm3 = vmmov 1   ;;  %vm96_vm5 = vcmask 64512  }
   0x5   :  { %v176_v7 = vld [vmem:[%s294_s1] ss:$0 sm:$0xff]  ;;  %vm138_vm14 = vcmask 57344   ;;  %s220_s2 = smov [#allocation2]  }
   0x6   :  { %v88_v9 = vand.u32 127, %v87_v8  ;;  %v90_v10 = vshrl.u32 %v87_v8, 7  ;;  %v75_v21 = vld [vmem:[%s296_s3] sm:$0xff]  ;;  %s165_s3 = sshll.u32 %s220_s2, 4  ;;  %s166_s3 = int_to_ptr.vmem [resolvable:$true] %s165_s3 }
   0x7   :  { %s192_s23 = scalar_lea.vmem %s166_s3, 32  ;;  %p197_p1 = scmp.lt.s32.totalorder %s166_s3, %s166_s3 }
   0x8   :  { %vm93_vm6 = vcmp.ne.s32.totalorder %v88_v9, %v90_v10  ;;  %v136_v44 = vsub.s32 %v88_v9, %v90_v10  ;;  %p193_p0 = scmp.ne.s32.totalorder %s166_s3, %s192_s23  ;;  %p198_p2 = scmp.lt.s32.totalorder %s192_s23, %s192_s23 }
   0xa   :  { %182 = vmatmul.mubr.msk.bf16.vlgmr.msra.gmra.mrb[0].mxu0 %vm26_vm0, %v25_v5  ;;  %p199_p3 = por %p198_p2, %p197_p1 }
   0xc   :  { %p200_p4 = pnand %p199_p3, %p193_p0 }
  0x83   :  { %v78_v6 = vpop.permute.xlu0 %77 }
  0x84   :  { %vm83_vm2 = vcmp.eq.s32.totalorder %v78_v6, %v176_v7 }
  0x85   :  { %vm258_vm4 = vmxor %vm83_vm2, %vm219_vm3 }
  0xdd   :  { %v67_v12 = vpop.f32.mrb[0].mxu0 }
  0xde   :  { %v183_v13 = vpop.f32.mrb[1].mxu0  ;;  %v100_v14 = vsel %vm258_vm4, %v67_v12, -inf  ;;  %vm85_vm7 = vcmp.lt.f32.partialorder %v67_v12, 1.0 }
  0xdf   :  { %v70_v15 = vpop.f32.mrb[2].mxu0  ;;  %v101_v16 = vsel %vm96_vm5, %v100_v14, -inf  ;;  %vm86_vm8 = vmand %vm83_vm2, %vm85_vm7 }
  0xe0   :  { %102 = vmax.xlane.f32.xlu1 %v101_v16  ;;  %v184_v17 = vpop.f32.mrb[3].mxu0  ;;  %vm265_vm9 = vmand %vm86_vm8, %vm93_vm6 }
  0xe1   :  { %v95_v19 = vsel %vm265_vm9, %v67_v12, inf }
  0xe2   :  { %v97_v20 = vsel %vm96_vm5, %v95_v19, inf }
  0xe3   :  { %98 = vmin.xlane.f32.xlu0 %v97_v20 }
 0x16d   :  { %v103_v24 = vpop.xlane.xlu1 %102 }
 0x16e   :  { %v105_v25 = vadd.f32 %v103_v24, %v75_v21 }
 0x170   :  { %v99_v22 = vpop.xlane.xlu0 %98 }
 0x171   :  { %v104_v23 = vsub.f32 %v99_v22, %v75_v21 }
 0x173   :  { %108 = vperm.xlu1 %191, %v104_v23  }
 0x177   :  { %115 = vperm.xlu1 %191, %v105_v25  }
 0x1f2   :  { %v109_v26 = vpop.permute.xlu1 %108 }
 0x1f3   :  { %vm111_vm10 = vcmp.gt.f32.partialorder %v67_v12, %v109_v26 }
 0x1f4   :  { %vm112_vm11 = vmand %vm258_vm4, %vm111_vm10 }
 0x1f5   :  { %v140_v28 = vsel %vm112_vm11, 1, %v218_v4 }
 0x1f6   :  { %v116_v27 = vpop.permute.xlu1 %115  ;;  %v141_v31 = vsel %vm96_vm5, %v140_v28, 0 }
 0x1f7   :  { %vm118_vm12 = vcmp.lt.f32.partialorder %v67_v12, %v116_v27  ;;  %v143_v36 = vshrl.u32 %v141_v31, 16  ;;  %v142_v38 = vand.u32 65535, %v141_v31 }
 0x1f8   :  { %vm119_vm13 = vmand %vm265_vm9, %vm118_vm12 }
 0x1f9   :  { %v120_v29 = vsel %vm119_vm13, 1, %v218_v4  ;;  %v145_v37 = vcvt.s32.f32 %v143_v36  ;;  %v144_v39 = vcvt.s32.f32 %v142_v38 }
 0x1fa   :  { %v121_v30 = vsel %vm96_vm5, %v120_v29, 0 }
 0x1fb   :  { %v123_v32 = vshrl.u32 %v121_v30, 16  ;;  %v122_v33 = vand.u32 65535, %v121_v30 }
 0x1fd   :  { %v125_v34 = vcvt.s32.f32 %v123_v32  ;;  %v124_v35 = vcvt.s32.f32 %v122_v33 }
 0x1ff   :  { %128 = vadd.xlane.f32.xlu1 %v125_v34  ;;  %126 = vadd.xlane.f32.xlu0 %v124_v35 }
 0x203   :  { %148 = vadd.xlane.f32.xlu0 %v145_v37 }
 0x207   :  { %146 = vadd.xlane.f32.xlu0 %v144_v39 }
 0x28c   :  { %v129_v40 = vpop.xlane.xlu1 %128  ;;  %v127_v41 = vpop.xlane.xlu0 %126 }
 0x28d   :  { %v131_v42 = vcvt.f32.s32 %v129_v40  ;;  %v130_v45 = vcvt.f32.s32 %v127_v41 }
 0x28f   :  { %v132_v43 = vshll.u32 %v131_v42, 16 }
 0x290   :  { %v149_v46 = vpop.xlane.xlu0 %148 }
 0x291   :  { %v133_v47 = vadd.s32 %v132_v43, %v130_v45  ;;  %v151_v48 = vcvt.f32.s32 %v149_v46 }
 0x293   :  { %v137_v49 = vrot.slane %v133_v47, %v136_v44  ;;  %v152_v51 = vshll.u32 %v151_v48, 16 }
 0x294   :  { %v147_v50 = vpop.xlane.xlu0 %146 }
 0x295   :  { %v150_v52 = vcvt.f32.s32 %v147_v50  ;;  %139 = vst.msk [vmem:[#allocation2] sm:$0x1] %vm138_vm14, %v137_v49 }
 0x297   :  { %v153_v53 = vadd.s32 %v152_v51, %v150_v52 }
 0x299   :  { %v157_v54 = vrot.slane %v153_v53, %v136_v44 }
 0x29b   :  { %158 = vst.msk [vmem:[#allocation2 + $0x1] sm:$0x1] %vm138_vm14, %v157_v54 }
 0x29c   :  { %203 = shalt.err (!%p200_p4)
}
 0x29d   :  { %s204_s26 = scalar_lea.hbm %s297_s4, 32 }
 0x29e   :  { %p205_p5 = scmp.ne.s32.totalorder %s297_s4, %s204_s26  ;;  %p208_p6 = scmp.lt.u32.totalorder %s204_s26, %s297_s4 }
 0x2a0   :  { %p210_p7 = pnand %p208_p6, %p205_p5 }
 0x2a2   :  { %213 = shalt.err (!%p210_p7)
}
 0x2a3   :  { %168 = dma.vmem_to_hbm [thread:$0]  %s166_s3, 32, %s297_s4, [#allocation3]  }
 0x2a4   :  { %214 = dma.done.wait [#allocation3], 32  }
 0x2a5   :  { %215 = vsyncadd [#allocation3], 4294967264 }
 0x2a6   :  { %172 = vsyncpa [#allocation3], 1 }

</bundles_post_ra>
